<compile_context>
chip_gen: v7x
topology: tpu7x:2x2x1
jax: 0.10.0
libtpu: 0.0.40
codegen_flags: <defaults>
</compile_context>

<pallas_src>
import math

import jax
import jax.numpy as jnp
from jax.experimental import pallas as pl
from jax.experimental.pallas import tpu as pltpu

STATE_DIM = 3          # Pendulum-v1 observation dim
HIDDEN_DIM = 128
ACTION_DIM = 1         # Pendulum-v1 action dim
ACTION_BOUND = 2.0     # env.action_space.high[0] for Pendulum-v1

_HALF_LOG_2PI = 0.5 * math.log(2.0 * math.pi)


def _round_up(n, m):
    return ((n + m - 1) // m) * m


def policy_net_kernel(x_ref, w1_ref, b1_ref, wh_ref, bh_ref, eps_ref, out_ref):
    x = x_ref[...]                       # (STATE_DIM, tb)   batch on lanes
    w1 = w1_ref[...]                     # (HIDDEN_DIM, STATE_DIM)
    tb = x.shape[1]

    # fc1 on the VPU in feature-major layout: h = W1 @ x + b1 -> (HIDDEN, tb).
    # K = 3, so three broadcast FMAs; bias folded in as the accumulator init.
    h = jnp.broadcast_to(b1_ref[...], (HIDDEN_DIM, tb))
    for k in range(STATE_DIM):
        h = h + w1[:, k:k + 1] * x[k:k + 1, :]
    h = jnp.maximum(h, 0.0)              # ReLU

    # Fused mu/std head: one (2,128) x (128,tb) MXU matmul.
    head = jnp.dot(wh_ref[...], h, preferred_element_type=jnp.float32) + bh_ref[...]
    mu = head[0:ACTION_DIM, :]                                   # (1, tb)
    std = jax.nn.softplus(head[ACTION_DIM:2 * ACTION_DIM, :])    # (1, tb)

    # Normal(mu, std).rsample() == mu + std * eps, eps ~ N(0, 1)
    eps = eps_ref[...]                   # (ACTION_DIM, tb)
    sample = mu + std * eps

    # Normal(mu, std).log_prob(sample): (sample - mu)/std is exactly eps.
    log_prob = -0.5 * eps * eps - jnp.log(std) - _HALF_LOG_2PI

    # tanh squashing (reference applies tanh to the already-squashed action
    # inside the correction term, i.e. tanh(tanh(sample)) -- reproduced).
    # TODO(synk): double-tanh is faithful to the PyTorch source but non-standard
    # (SAC normally uses log(1 - tanh(sample)^2)).
    t = jnp.tanh(sample)
    log_prob = log_prob - jnp.log(1.0 - jnp.tanh(t) ** 2 + 1e-7)
    action = t * ACTION_BOUND

    # Two full-lane row stores (no lane concat, unmasked vst).
    out_ref[0:ACTION_DIM, :] = action
    out_ref[ACTION_DIM:2 * ACTION_DIM, :] = log_prob


def policy_net_forward(x, fused_params, eps, *, block_b=4096):
    """x: (B, STATE_DIM) f32; eps: (B, ACTION_DIM) f32.
    Returns (action, log_prob), each (B, ACTION_DIM) f32."""
    w1_t, b1_t, wh_t, bh_t = fused_params
    B = x.shape[0]

    # Lane-aligned batch padding + tile selection.
    B_pad = _round_up(max(B, 1), 128)
    tb = min(block_b, B_pad)
    # Force >= 2 grid steps when the batch allows it (v7x megacore sharding).
    if B_pad // tb < 2 and B_pad >= 256:
        tb = _round_up(pl.cdiv(B_pad, 2), 128)
    B_pad = _round_up(B_pad, tb)
    grid = (B_pad // tb,)

    # Layout plumbing: batch onto the lane (last) dim, pad the remainder tile.
    x_t = jnp.pad(x.T, ((0, 0), (0, B_pad - B)))      # (STATE_DIM, B_pad)
    eps_t = jnp.pad(eps.T, ((0, 0), (0, B_pad - B)))  # (ACTION_DIM, B_pad)

    out = pl.pallas_call(
        policy_net_kernel,
        out_shape=jax.ShapeDtypeStruct((2 * ACTION_DIM, B_pad), jnp.float32),
        grid=grid,
        in_specs=[
            pl.BlockSpec((STATE_DIM, tb), lambda i: (0, i)),                 # x^T
            pl.BlockSpec((HIDDEN_DIM, STATE_DIM), lambda i: (0, 0)),         # W1^T
            pl.BlockSpec((HIDDEN_DIM, 1), lambda i: (0, 0)),                 # b1^T
            pl.BlockSpec((2 * ACTION_DIM, HIDDEN_DIM), lambda i: (0, 0)),    # Whead^T
            pl.BlockSpec((2 * ACTION_DIM, 1), lambda i: (0, 0)),             # bhead^T
            pl.BlockSpec((ACTION_DIM, tb), lambda i: (0, i)),                # eps^T
        ],
        out_specs=pl.BlockSpec((2 * ACTION_DIM, tb), lambda i: (0, i)),
        compiler_params=pltpu.CompilerParams(
            dimension_semantics=("parallel",)),
    )(x_t, w1_t, b1_t, wh_t, bh_t, eps_t)

    action = out[0:ACTION_DIM, :B].T
    log_prob = out[ACTION_DIM:2 * ACTION_DIM, :B].T
    return action, log_prob


def init_params(key):
    """Deterministic init mirroring torch.nn.Linear: U(-1/sqrt(fan_in), 1/sqrt(fan_in)).
    Returns the raw (unfused) parameter tuple."""
    k1, k2, k3, k4, k5, k6 = jax.random.split(key, 6)

    def lin(kw, kb, fan_in, fan_out):
        bound = 1.0 / math.sqrt(fan_in)
        w = jax.random.uniform(kw, (fan_in, fan_out), jnp.float32, -bound, bound)
        b = jax.random.uniform(kb, (1, fan_out), jnp.float32, -bound, bound)
        return w, b

    w1, b1 = lin(k1, k2, STATE_DIM, HIDDEN_DIM)
    wmu, bmu = lin(k3, k4, HIDDEN_DIM, ACTION_DIM)
    wstd, bstd = lin(k5, k6, HIDDEN_DIM, ACTION_DIM)
    return (w1, b1, wmu, bmu, wstd, bstd)


def fuse_params(raw_params):
    """Fuse the mu/std heads and pre-transpose all weights to feature-major
    layout (done once, outside the kernel hot path)."""
    w1, b1, wmu, bmu, wstd, bstd = raw_params
    w1_t = jnp.asarray(w1).T                                  # (HIDDEN_DIM, STATE_DIM)
    b1_t = jnp.asarray(b1).reshape(HIDDEN_DIM, 1)             # (HIDDEN_DIM, 1)
    wh_t = jnp.concatenate([wmu, wstd], axis=1).T             # (2*ACTION_DIM, HIDDEN_DIM)
    bh_t = jnp.concatenate([bmu, bstd], axis=1).reshape(2 * ACTION_DIM, 1)
    return (w1_t, b1_t, wh_t, bh_t)


def policy_net_reference(x, raw_params, eps):
    """Pure-JAX reference reproducing the PyTorch forward exactly."""
    w1, b1, wmu, bmu, wstd, bstd = raw_params
    h = jnp.maximum(x @ w1 + b1, 0.0)
    mu = h @ wmu + bmu
    std = jax.nn.softplus(h @ wstd + bstd)
    sample = mu + std * eps
    z = (sample - mu) / std
    log_prob = -0.5 * z * z - jnp.log(std) - _HALF_LOG_2PI
    action = jnp.tanh(sample)
    log_prob = log_prob - jnp.log(1.0 - jnp.tanh(action) ** 2 + 1e-7)
    action = action * ACTION_BOUND
    return action, log_prob


if __name__ == "__main__":
    key = jax.random.PRNGKey(0)
    k_params, k_x, k_eps = jax.random.split(key, 3)

    B = 8
    raw_params = init_params(k_params)
    fused_params = fuse_params(raw_params)
    x = jax.random.normal(k_x, (B, STATE_DIM), jnp.float32)
    eps = jax.random.normal(k_eps, (B, ACTION_DIM), jnp.float32)

    action, log_prob = policy_net_forward(x, fused_params, eps)
    jax.block_until_ready((action, log_prob))

    # Correctness vs. pure-JAX reference of the original PyTorch forward.
    ref_action, ref_log_prob = policy_net_reference(x, raw_params, eps)
    assert action.shape == (B, ACTION_DIM)
    assert log_prob.shape == (B, ACTION_DIM)
    assert bool(jnp.all(jnp.isfinite(action)))
    assert bool(jnp.all(jnp.isfinite(log_prob)))
    assert bool(jnp.all(jnp.abs(action) <= ACTION_BOUND))
    assert bool(jnp.allclose(action, ref_action, rtol=1e-4, atol=1e-4))
    assert bool(jnp.allclose(log_prob, ref_log_prob, rtol=1e-4, atol=1e-4))
    print("KERNEL_OK")
</pallas_src>

<mosaic_0001>
module attributes {stable_mosaic.version = 11 : i64} {
  func.func @policy_net_kernel(%arg0: i32, %arg1: memref<3x128xf32, #tpu.memory_space<vmem>>, %arg2: memref<128x3xf32, #tpu.memory_space<vmem>>, %arg3: memref<128x1xf32, #tpu.memory_space<vmem>>, %arg4: memref<2x128xf32, #tpu.memory_space<vmem>>, %arg5: memref<2x1xf32, #tpu.memory_space<vmem>>, %arg6: memref<1x128xf32, #tpu.memory_space<vmem>>, %arg7: memref<2x128xf32, #tpu.memory_space<vmem>>) attributes {dimension_semantics = [#tpu.dimension_semantics<parallel>], iteration_bounds = array<i64: 1>, scalar_prefetch = 0 : i64, scratch_operands = 0 : i64, tpu.core_type = #tpu.core_type<tc>, window_params = [{transform_indices = @transform_0, window_bounds = array<i64: 3, 128>}, {pipeline_mode = #tpu.pipeline_mode<synchronous>, transform_indices = @transform_1, window_bounds = array<i64: 128, 3>}, {pipeline_mode = #tpu.pipeline_mode<synchronous>, transform_indices = @transform_2, window_bounds = array<i64: 128, 1>}, {pipeline_mode = #tpu.pipeline_mode<synchronous>, transform_indices = @transform_3, window_bounds = array<i64: 2, 128>}, {pipeline_mode = #tpu.pipeline_mode<synchronous>, transform_indices = @transform_4, window_bounds = array<i64: 2, 1>}, {transform_indices = @transform_5, window_bounds = array<i64: 1, 128>}, {transform_indices = @transform_6, window_bounds = array<i64: 2, 128>}]} {
    %c0 = arith.constant 0 : index
    %c0_0 = arith.constant 0 : index
    %0 = vector.load %arg1[%c0, %c0_0] : memref<3x128xf32, #tpu.memory_space<vmem>>, vector<3x128xf32>
    %c0_1 = arith.constant 0 : index
    %c0_2 = arith.constant 0 : index
    %1 = vector.load %arg2[%c0_1, %c0_2] : memref<128x3xf32, #tpu.memory_space<vmem>>, vector<128x3xf32>
    %c0_3 = arith.constant 0 : index
    %c0_4 = arith.constant 0 : index
    %2 = vector.load %arg3[%c0_3, %c0_4] : memref<128x1xf32, #tpu.memory_space<vmem>>, vector<128x1xf32>
    %3 = vector.shape_cast %2 : vector<128x1xf32> to vector<128x1xf32>
    %4 = vector.broadcast %3 : vector<128x1xf32> to vector<128x128xf32>
    %5 = vector.extract_strided_slice %1 {offsets = [0, 0], sizes = [128, 1], strides = [1, 1]} : vector<128x3xf32> to vector<128x1xf32>
    %6 = vector.extract_strided_slice %0 {offsets = [0, 0], sizes = [1, 128], strides = [1, 1]} : vector<3x128xf32> to vector<1x128xf32>
    %7 = vector.broadcast %5 : vector<128x1xf32> to vector<128x128xf32>
    %8 = vector.broadcast %6 : vector<1x128xf32> to vector<128x128xf32>
    %9 = arith.mulf %7, %8 : vector<128x128xf32>
    %10 = arith.addf %4, %9 : vector<128x128xf32>
    %11 = vector.extract_strided_slice %1 {offsets = [0, 1], sizes = [128, 1], strides = [1, 1]} : vector<128x3xf32> to vector<128x1xf32>
    %12 = vector.extract_strided_slice %0 {offsets = [1, 0], sizes = [1, 128], strides = [1, 1]} : vector<3x128xf32> to vector<1x128xf32>
    %13 = vector.broadcast %11 : vector<128x1xf32> to vector<128x128xf32>
    %14 = vector.broadcast %12 : vector<1x128xf32> to vector<128x128xf32>
    %15 = arith.mulf %13, %14 : vector<128x128xf32>
    %16 = arith.addf %10, %15 : vector<128x128xf32>
    %17 = vector.extract_strided_slice %1 {offsets = [0, 2], sizes = [128, 1], strides = [1, 1]} : vector<128x3xf32> to vector<128x1xf32>
    %18 = vector.extract_strided_slice %0 {offsets = [2, 0], sizes = [1, 128], strides = [1, 1]} : vector<3x128xf32> to vector<1x128xf32>
    %19 = vector.broadcast %17 : vector<128x1xf32> to vector<128x128xf32>
    %20 = vector.broadcast %18 : vector<1x128xf32> to vector<128x128xf32>
    %21 = arith.mulf %19, %20 : vector<128x128xf32>
    %22 = arith.addf %16, %21 : vector<128x128xf32>
    %cst = arith.constant 0.000000e+00 : f32
    %23 = vector.broadcast %cst : f32 to vector<128x128xf32>
    %24 = arith.maximumf %22, %23 : vector<128x128xf32>
    %c0_5 = arith.constant 0 : index
    %c0_6 = arith.constant 0 : index
    %25 = vector.load %arg4[%c0_5, %c0_6] : memref<2x128xf32, #tpu.memory_space<vmem>>, vector<2x128xf32>
    %cst_7 = arith.constant dense<0.000000e+00> : vector<2x128xf32>
    %26 = tpu.matmul %25, %24, %cst_7 {dimension_numbers = #tpu.dot_dimension_numbers<[1], [0], [0], [1], [0, 0, 1, 1], [], []>} : vector<2x128xf32>, vector<128x128xf32>, vector<2x128xf32> -> vector<2x128xf32>
    %c0_8 = arith.constant 0 : index
    %c0_9 = arith.constant 0 : index
    %27 = vector.load %arg5[%c0_8, %c0_9] : memref<2x1xf32, #tpu.memory_space<vmem>>, vector<2x1xf32>
    %28 = vector.broadcast %27 : vector<2x1xf32> to vector<2x128xf32>
    %29 = arith.addf %26, %28 : vector<2x128xf32>
    %30 = vector.extract_strided_slice %29 {offsets = [0, 0], sizes = [1, 128], strides = [1, 1]} : vector<2x128xf32> to vector<1x128xf32>
    %31 = vector.extract_strided_slice %29 {offsets = [1, 0], sizes = [1, 128], strides = [1, 1]} : vector<2x128xf32> to vector<1x128xf32>
    %cst_10 = arith.constant 0.000000e+00 : f32
    %32 = vector.broadcast %cst_10 : f32 to vector<1x128xf32>
    %33 = arith.maximumf %31, %32 : vector<1x128xf32>
    %34 = vector.broadcast %cst_10 : f32 to vector<1x128xf32>
    %35 = arith.subf %31, %34 : vector<1x128xf32>
    %36 = arith.cmpf one, %35, %35 : vector<1x128xf32>
    %37 = vector.broadcast %cst_10 : f32 to vector<1x128xf32>
    %38 = arith.addf %31, %37 : vector<1x128xf32>
    %39 = math.absf %35 : vector<1x128xf32>
    %cst_11 = arith.constant 0.000000e+00 : f32
    %40 = vector.broadcast %cst_11 : f32 to vector<1x128xf32>
    %41 = arith.subf %40, %39 : vector<1x128xf32>
    %42 = math.exp %41 : vector<1x128xf32>
    %43 = math.log1p %42 : vector<1x128xf32>
    %44 = arith.addf %33, %43 : vector<1x128xf32>
    %45 = arith.select %36, %38, %44 : vector<1x128xi1>, vector<1x128xf32>
    %c0_12 = arith.constant 0 : index
    %c0_13 = arith.constant 0 : index
    %46 = vector.load %arg6[%c0_12, %c0_13] : memref<1x128xf32, #tpu.memory_space<vmem>>, vector<1x128xf32>
    %47 = arith.mulf %45, %46 : vector<1x128xf32>
    %48 = arith.addf %30, %47 : vector<1x128xf32>
    %cst_14 = arith.constant -5.000000e-01 : f32
    %49 = vector.broadcast %cst_14 : f32 to vector<1x128xf32>
    %50 = arith.mulf %49, %46 : vector<1x128xf32>
    %51 = arith.mulf %50, %46 : vector<1x128xf32>
    %52 = math.log %45 : vector<1x128xf32>
    %53 = arith.subf %51, %52 : vector<1x128xf32>
    %cst_15 = arith.constant 0.918938517 : f32
    %54 = vector.broadcast %cst_15 : f32 to vector<1x128xf32>
    %55 = arith.subf %53, %54 : vector<1x128xf32>
    %56 = math.tanh %48 : vector<1x128xf32>
    %57 = math.tanh %56 : vector<1x128xf32>
    %58 = arith.mulf %57, %57 : vector<1x128xf32>
    %cst_16 = arith.constant 1.000000e+00 : f32
    %59 = vector.broadcast %cst_16 : f32 to vector<1x128xf32>
    %60 = arith.subf %59, %58 : vector<1x128xf32>
    %cst_17 = arith.constant 1.000000e-07 : f32
    %61 = vector.broadcast %cst_17 : f32 to vector<1x128xf32>
    %62 = arith.addf %60, %61 : vector<1x128xf32>
    %63 = math.log %62 : vector<1x128xf32>
    %64 = arith.subf %55, %63 : vector<1x128xf32>
    %cst_18 = arith.constant 2.000000e+00 : f32
    %65 = vector.broadcast %cst_18 : f32 to vector<1x128xf32>
    %66 = arith.mulf %56, %65 : vector<1x128xf32>
    %c0_19 = arith.constant 0 : index
    %c0_20 = arith.constant 0 : index
    %67 = vector.load %arg7[%c0_19, %c0_20] : memref<2x128xf32, #tpu.memory_space<vmem>>, vector<1x128xf32>
    tpu.vector_store %arg7[%c0_19, %c0_20], %66 {strides = array<i32>} : memref<2x128xf32, #tpu.memory_space<vmem>>, vector<1x128xf32>,
    %c1 = arith.constant 1 : index
    %c0_21 = arith.constant 0 : index
    %68 = vector.load %arg7[%c1, %c0_21] : memref<2x128xf32, #tpu.memory_space<vmem>>, vector<1x128xf32>
    tpu.vector_store %arg7[%c1, %c0_21], %64 {strides = array<i32>} : memref<2x128xf32, #tpu.memory_space<vmem>>, vector<1x128xf32>,
    return
  }
  func.func @transform_0(%arg0: i32) -> (i32, i32) {
    %c0_i32 = arith.constant 0 : i32
    %c0_i32_0 = arith.constant 0 : i32
    return %c0_i32, %arg0 : i32, i32
  }
  func.func @transform_1(%arg0: i32) -> (i32, i32) {
    %c0_i32 = arith.constant 0 : i32
    %c0_i32_0 = arith.constant 0 : i32
    %c0_i32_1 = arith.constant 0 : i32
    return %c0_i32, %c0_i32_0 : i32, i32
  }
  func.func @transform_2(%arg0: i32) -> (i32, i32) {
    %c0_i32 = arith.constant 0 : i32
    %c0_i32_0 = arith.constant 0 : i32
    %c0_i32_1 = arith.constant 0 : i32
    return %c0_i32, %c0_i32_0 : i32, i32
  }
  func.func @transform_3(%arg0: i32) -> (i32, i32) {
    %c0_i32 = arith.constant 0 : i32
    %c0_i32_0 = arith.constant 0 : i32
    %c0_i32_1 = arith.constant 0 : i32
    return %c0_i32, %c0_i32_0 : i32, i32
  }
  func.func @transform_4(%arg0: i32) -> (i32, i32) {
    %c0_i32 = arith.constant 0 : i32
    %c0_i32_0 = arith.constant 0 : i32
    %c0_i32_1 = arith.constant 0 : i32
    return %c0_i32, %c0_i32_0 : i32, i32
  }
  func.func @transform_5(%arg0: i32) -> (i32, i32) {
    %c0_i32 = arith.constant 0 : i32
    %c0_i32_0 = arith.constant 0 : i32
    return %c0_i32, %arg0 : i32, i32
  }
  func.func @transform_6(%arg0: i32) -> (i32, i32) {
    %c0_i32 = arith.constant 0 : i32
    %c0_i32_0 = arith.constant 0 : i32
    return %c0_i32, %arg0 : i32, i32
  }
}

</mosaic_0001>

<bundles_post_ra>
// kernel: tpu_custom_call.1
= control target key start
LH: loop header
LB: loop body
LE: loop exit
PB: predicated region body
PF: predicated region fallthrough
CT: control target
= control target key end

     0   :  { %v781_v2 = vmov 0   ;;  %v782_v6 = vmov 1   ;;  %s1138_s0 = inlined_call_operand.vmem [shape: f32[3,128], index: 0, kind: input, shape index: {}]   ;;  %s1139_s1 = inlined_call_operand.vmem [shape: f32[128,3], index: 1, kind: input, shape index: {}]   ;;  %s1140_s2 = inlined_call_operand.vmem [shape: f32[128,1], index: 2, kind: input, shape index: {}]   ;;  %s1141_s3 = inlined_call_operand.vmem [shape: f32[2,128], index: 3, kind: input, shape index: {}]   ;;  %s1142_s4 = inlined_call_operand.vmem [shape: f32[2,1], index: 4, kind: input, shape index: {}]   ;;  %s1143_s5 = inlined_call_operand.vmem [shape: f32[1,128], index: 5, kind: input, shape index: {}]   ;;  %s1144_s6 = inlined_call_operand.hbm [shape: f32[2,128], index: 6, kind: output, shape index: {}]  }
   0x1   :  { %v41_v0 = vld [vmem:[%s1140_s2] sm:$0xff]  ;;  %710 = vset.pattern.permute.xlu1 %v781_v2  ;;  %709 = vset.pattern.permute.xlu0 %v781_v2  ;;  %v42_v3 = vld [vmem:[%s1140_s2 + $0x8] sm:$0xff]  ;;  %v28_v5 = vld [vmem:[%s1139_s1 + $0x18] sm:$0xff] }
   0x2   :  { %v830_v1 = vld [vmem:[%s1139_s1] sm:$0xff]  ;;  %59 = vperm.xlu1 %710, %v41_v0   ;;  %v26_v4 = vld [vmem:[%s1139_s1 + $0x8] sm:$0xff] }
   0x3   :  { %139 = vperm.xlu0 %709, %v830_v1  }
   0x6   :  { %64 = vperm.xlu1 %710, %v42_v3  }
   0x7   :  { %144 = vperm.xlu0 %709, %v26_v4  }
   0xa   :  { %711 = vset.pattern.permute.xlu1 %v782_v6 }
   0xb   :  { %154 = vperm.xlu0 %709, %v28_v5  }
   0xc   :  { %11 = vsyncpa [#allocation3], 0  ;;  %258 = vperm.xlu1 %711, %v26_v4   ;;  %v43_v7 = vld [vmem:[%s1140_s2 + $0x10] sm:$0xff]  ;;  %v30_v9 = vld [vmem:[%s1139_s1 + $0x28] sm:$0xff]  ;;  %v783_v11 = vmov 2   ;;  %v784_v27 = vmov 0.0|0.0   ;;  %v217_v57 = vlaneseq }
   0xd   :  { %v27_v8 = vld [vmem:[%s1139_s1 + $0x10] sm:$0xff]  ;;  %v45_v10 = vld [vmem:[%s1140_s2 + $0x20] sm:$0xff]  ;;  %v863_v12 = vld [vmem:[%s1139_s1 + $0x38] sm:$0xff]  ;;  %677 = vmatprep.subr.bf16.mxu0 %v784_v27  ;;  %vm785_vm0 = vmmov 0  }
   0xe   :  { %v44_v13 = vld [vmem:[%s1140_s2 + $0x18] sm:$0xff]  ;;  %v47_v14 = vld [vmem:[%s1140_s2 + $0x30] sm:$0xff]  ;;  %v876_v15 = vld [vmem:[%s1139_s1 + $0x48] sm:$0xff]  ;;  %v1013_v60 = vshrl.u32 %v217_v57, 7 }
   0xf   :  { %69 = vperm.xlu0 %709, %v43_v7   ;;  %v49_v16 = vld [vmem:[%s1140_s2 + $0x40] sm:$0xff]  ;;  %v890_v18 = vld [vmem:[%s1139_s1 + $0x58] sm:$0xff]  ;;  %v51_v19 = vld [vmem:[%s1140_s2 + $0x50] sm:$0xff] }
  0x10   :  { %712 = vset.pattern.permute.xlu1 %v781_v2  ;;  %v29_v17 = vld [vmem:[%s1139_s1 + $0x20] sm:$0xff]  ;;  %v900_v20 = vld [vmem:[%s1139_s1 + $0x68] sm:$0xff]  ;;  %v913_v23 = vld [vmem:[%s1139_s1 + $0x78] sm:$0xff]  ;;  %v219_v62 = vsub.s32 0, %v1013_v60  ;;  %v319_v3 = vsub.s32 1, %v1013_v60  ;;  %v419_v7 = vsub.s32 2, %v1013_v60 }
  0x11   :  { %149 = vperm.xlu1 %712, %v27_v8   ;;  %v46_v21 = vld [vmem:[%s1140_s2 + $0x28] sm:$0xff]  ;;  %v53_v22 = vld [vmem:[%s1140_s2 + $0x60] sm:$0xff]  ;;  %v55_v24 = vld [vmem:[%s1140_s2 + $0x70] sm:$0xff] }
  0x12   :  { %v31_v25 = vld [vmem:[%s1139_s1 + $0x30] sm:$0xff]  ;;  %v48_v26 = vld [vmem:[%s1140_s2 + $0x38] sm:$0xff]  ;;  %v33_v28 = vld [vmem:[%s1139_s1 + $0x40] sm:$0xff] }
  0x13   :  { %164 = vperm.xlu0 %709, %v30_v9   ;;  %v35_v29 = vld [vmem:[%s1139_s1 + $0x50] sm:$0xff]  ;;  %v37_v30 = vld [vmem:[%s1139_s1 + $0x60] sm:$0xff]  ;;  %v50_v32 = vld [vmem:[%s1140_s2 + $0x48] sm:$0xff] }
  0x14   :  { %v948_v31 = vld [vmem:[%s1139_s1 + $0x70] sm:$0xff]  ;;  %v52_v33 = vld [vmem:[%s1140_s2 + $0x58] sm:$0xff]  ;;  %v54_v43 = vld [vmem:[%s1140_s2 + $0x68] sm:$0xff] }
  0x15   :  { %713 = vset.pattern.permute.xlu1 %v783_v11  ;;  %v56_v55 = vld [vmem:[%s1140_s2 + $0x78] sm:$0xff] }
  0x16   :  { %354 = vperm.xlu1 %713, %v830_v1  }
  0x17   :  { %79 = vperm.xlu0 %709, %v45_v10  }
  0x1a   :  { %358 = vperm.xlu1 %713, %v26_v4  }
  0x1b   :  { %174 = vperm.xlu0 %709, %v863_v12  }
  0x1e   :  { %714 = vset.pattern.permute.xlu1 %v781_v2 }
  0x1f   :  { %74 = vperm.xlu1 %714, %v44_v13   ;;  %89 = vperm.xlu0 %709, %v47_v14  }
  0x23   :  { %715 = vset.pattern.permute.xlu1 %v782_v6  ;;  %184 = vperm.xlu0 %709, %v876_v15  }
  0x24   :  { %266 = vperm.xlu1 %715, %v28_v5  }
  0x27   :  { %99 = vperm.xlu0 %709, %v49_v16  }
  0x28   :  { %716 = vset.pattern.permute.xlu1 %v781_v2 }
  0x29   :  { %159 = vperm.xlu1 %716, %v29_v17  }
  0x2b   :  { %194 = vperm.xlu0 %709, %v890_v18  }
  0x2d   :  { %717 = vset.pattern.permute.xlu1 %v783_v11 }
  0x2e   :  { %362 = vperm.xlu1 %717, %v27_v8  }
  0x2f   :  { %109 = vperm.xlu0 %709, %v51_v19  }
  0x32   :  { %366 = vperm.xlu1 %717, %v28_v5  }
  0x33   :  { %204 = vperm.xlu0 %709, %v900_v20  }
  0x36   :  { %718 = vset.pattern.permute.xlu1 %v781_v2 }
  0x37   :  { %84 = vperm.xlu1 %718, %v46_v21   ;;  %119 = vperm.xlu0 %709, %v53_v22  }
  0x3b   :  { %719 = vset.pattern.permute.xlu1 %v782_v6  ;;  %214 = vperm.xlu0 %709, %v913_v23  }
  0x3c   :  { %274 = vperm.xlu1 %719, %v30_v9  }
  0x3f   :  { %129 = vperm.xlu0 %709, %v55_v24   ;;  %v470_v24 = vld [vmem:[%s1142_s4] sm:$0x3] }
  0x40   :  { %720 = vset.pattern.permute.xlu1 %v781_v2 }
  0x41   :  { %169 = vperm.xlu1 %720, %v31_v25  }
  0x43   :  { %738 = vset.pattern.permute.xlu0 %v782_v6 }
  0x44   :  { %254 = vperm.xlu0 %738, %v830_v1   ;;  %v24_v1 = vld [vmem:[%s1138_s0] sm:$0x7] }
  0x45   :  { %721 = vset.pattern.permute.xlu1 %v783_v11  ;;  %v1030_v4 = vrot.slane %v24_v1, %v219_v62 }
  0x46   :  { %370 = vperm.xlu1 %721, %v29_v17  }
  0x48   :  { %262 = vperm.xlu0 %738, %v27_v8  }
  0x4a   :  { %374 = vperm.xlu1 %721, %v30_v9  }
  0x4c   :  { %270 = vperm.xlu0 %738, %v29_v17  }
  0x4e   :  { %722 = vset.pattern.permute.xlu1 %v781_v2 }
  0x4f   :  { %94 = vperm.xlu1 %722, %v48_v26  }
  0x50   :  { %278 = vperm.xlu0 %738, %v31_v25  }
  0x53   :  { %723 = vset.pattern.permute.xlu1 %v782_v6 }
  0x54   :  { %282 = vperm.xlu1 %723, %v863_v12   ;;  %286 = vperm.xlu0 %738, %v33_v28  }
  0x58   :  { %724 = vset.pattern.permute.xlu1 %v781_v2  ;;  %294 = vperm.xlu0 %738, %v35_v29  }
  0x59   :  { %179 = vperm.xlu1 %724, %v33_v28  }
  0x5c   :  { %302 = vperm.xlu0 %738, %v37_v30  }
  0x5d   :  { %725 = vset.pattern.permute.xlu1 %v783_v11 }
  0x5e   :  { %378 = vperm.xlu1 %725, %v31_v25  }
  0x60   :  { %310 = vperm.xlu0 %738, %v948_v31  }
  0x62   :  { %382 = vperm.xlu1 %725, %v863_v12   ;;  %v1042_v12 = vrot.slane %v24_v1, %v419_v7 }
  0x64   :  { %742 = vset.pattern.permute.xlu0 %v783_v11 }
  0x65   :  { %414 = vperm.xlu0 %742, %v913_v23  }
  0x66   :  { %726 = vset.pattern.permute.xlu1 %v781_v2 }
  0x67   :  { %104 = vperm.xlu1 %726, %v50_v32  }
  0x69   :  { %744 = vset.pattern.permute.xlu0 %v781_v2 }
  0x6b   :  { %727 = vset.pattern.permute.xlu1 %v782_v6 }
  0x6c   :  { %290 = vperm.xlu1 %727, %v876_v15  }
  0x70   :  { %728 = vset.pattern.permute.xlu1 %v781_v2 }
  0x71   :  { %189 = vperm.xlu1 %728, %v35_v29  }
  0x75   :  { %729 = vset.pattern.permute.xlu1 %v783_v11 }
  0x76   :  { %386 = vperm.xlu1 %729, %v33_v28  }
  0x7a   :  { %390 = vperm.xlu1 %729, %v876_v15  }
  0x7e   :  { %730 = vset.pattern.permute.xlu1 %v781_v2 }
  0x7f   :  { %114 = vperm.xlu1 %730, %v52_v33  }
  0x81   :  { %v968_v34 = vpop.permute.xlu1 %59 }
  0x82   :  { %v970_v35 = vpop.permute.xlu0 %139 }
  0x83   :  { %731 = vset.pattern.permute.xlu1 %v782_v6  ;;  %v221_v13 = vmul.f32 %v1030_v4, %v970_v35 }
  0x84   :  { %298 = vperm.xlu1 %731, %v890_v18  }
  0x85   :  { %v65_v36 = vpop.permute.xlu1 %64  ;;  %v237_v21 = vadd.f32 %v221_v13, %v968_v34 }
  0x86   :  { %v145_v37 = vpop.permute.xlu0 %144 }
  0x87   :  { %v222_v9 = vmul.f32 %v1030_v4, %v145_v37 }
  0x88   :  { %732 = vset.pattern.permute.xlu1 %v781_v2 }
  0x89   :  { %199 = vperm.xlu1 %732, %v37_v30   ;;  %v238_v14 = vadd.f32 %v222_v9, %v65_v36 }
  0x8a   :  { %v155_v38 = vpop.permute.xlu0 %154 }
  0x8b   :  { %v259_v39 = vpop.permute.xlu1 %258  ;;  %v224_v16 = vmul.f32 %v1030_v4, %v155_v38 }
  0x8d   :  { %733 = vset.pattern.permute.xlu1 %v783_v11 }
  0x8e   :  { %394 = vperm.xlu1 %733, %v35_v29   ;;  %v976_v40 = vpop.permute.xlu0 %69 }
  0x90   :  { %v978_v41 = vpop.permute.xlu1 %149 }
  0x91   :  { %v223_v22 = vmul.f32 %v1030_v4, %v978_v41 }
  0x92   :  { %398 = vperm.xlu1 %733, %v890_v18   ;;  %v981_v42 = vpop.permute.xlu0 %164  ;;  %v786_v18 = vmov 0.0  }
  0x93   :  { %674 = vmatprep.mubr.msk.f32.mxu0 %vm785_vm0, %v786_v18  ;;  %v239_v36 = vadd.f32 %v223_v22, %v976_v40 }
  0x95   :  { %v986_v44 = vpop.permute.xlu1 %354 }
  0x96   :  { %734 = vset.pattern.permute.xlu1 %v781_v2  ;;  %v989_v45 = vpop.permute.xlu0 %79 }
  0x97   :  { %124 = vperm.xlu1 %734, %v54_v43  }
  0x99   :  { %v359_v46 = vpop.permute.xlu1 %358 }
  0x9a   :  { %v991_v47 = vpop.permute.xlu0 %174  ;;  %v422_v17 = vmul.f32 %v1042_v12, %v359_v46 }
  0x9b   :  { %735 = vset.pattern.permute.xlu1 %v782_v6 }
  0x9c   :  { %306 = vperm.xlu1 %735, %v900_v20  }
  0x9e   :  { %v75_v48 = vpop.permute.xlu1 %74  ;;  %v995_v49 = vpop.permute.xlu0 %89 }
  0x9f   :  { %v240_v26 = vadd.f32 %v224_v16, %v75_v48 }
  0xa0   :  { %736 = vset.pattern.permute.xlu1 %v781_v2 }
  0xa1   :  { %209 = vperm.xlu1 %736, %v948_v31  }
  0xa2   :  { %v999_v50 = vpop.permute.xlu0 %184 }
  0xa3   :  { %v267_v51 = vpop.permute.xlu1 %266 }
  0xa5   :  { %737 = vset.pattern.permute.xlu1 %v783_v11 }
  0xa6   :  { %402 = vperm.xlu1 %737, %v37_v30   ;;  %v1002_v52 = vpop.permute.xlu0 %99  ;;  %v226_v30 = vmul.f32 %v1030_v4, %v981_v42 }
  0xa8   :  { %v160_v53 = vpop.permute.xlu1 %159 }
  0xa9   :  { %v225_v34 = vmul.f32 %v1030_v4, %v160_v53 }
  0xaa   :  { %406 = vperm.xlu1 %737, %v900_v20   ;;  %v1005_v54 = vpop.permute.xlu0 %194 }
  0xab   :  { %v241_v53 = vadd.f32 %v225_v34, %v989_v45 }
  0xad   :  { %v363_v56 = vpop.permute.xlu1 %362 }
  0xae   :  { %739 = vset.pattern.permute.xlu1 %v781_v2  ;;  %v1011_v58 = vpop.permute.xlu0 %109  ;;  %v423_v43 = vmul.f32 %v1042_v12, %v363_v56 }
  0xaf   :  { %134 = vperm.xlu1 %739, %v56_v55  }
  0xb1   :  { %v367_v59 = vpop.permute.xlu1 %366 }
  0xb2   :  { %v1015_v61 = vpop.permute.xlu0 %204  ;;  %v424_v28 = vmul.f32 %v1042_v12, %v367_v59 }
  0xb3   :  { %740 = vset.pattern.permute.xlu1 %v782_v6  ;;  %v1034_v6 = vrot.slane %v24_v1, %v319_v3 }
  0xb4   :  { %314 = vperm.xlu1 %740, %v913_v23  }
  0xb6   :  { %v85_v63 = vpop.permute.xlu1 %84  ;;  %v1020_v0 = vpop.permute.xlu0 %119 }
  0xb7   :  { %v242_v48 = vadd.f32 %v226_v30, %v85_v63 }
  0xb8   :  { %741 = vset.pattern.permute.xlu1 %v783_v11  ;;  %v322_v11 = vmul.f32 %v1034_v6, %v259_v39 }
  0xb9   :  { %410 = vperm.xlu1 %741, %v948_v31   ;;  %v421_v31 = vmul.f32 %v1042_v12, %v986_v44 }
  0xba   :  { %v1032_v5 = vpop.permute.xlu0 %214  ;;  %v338_v19 = vadd.f32 %v322_v11, %v238_v14 }
  0xbb   :  { %v275_v8 = vpop.permute.xlu1 %274 }
  0xbc   :  { %v438_v25 = vadd.f32 %v422_v17, %v338_v19  ;;  %v326_v37 = vmul.f32 %v1034_v6, %v275_v8 }
  0xbd   :  { %743 = vset.pattern.permute.xlu1 %v781_v2  ;;  %v324_v2 = vmul.f32 %v1034_v6, %v267_v51 }
  0xbe   :  { %v1039_v10 = vpop.permute.xlu0 %129  ;;  %473 = vperm.xlu1 %743, %v470_v24   ;;  %v454_v41 = vmax.f32 %v438_v25, 0.0  ;;  %v342_v59 = vadd.f32 %v326_v37, %v242_v48 }
  0xbf   :  { %v340_v33 = vadd.f32 %v324_v2, %v240_v26 }
  0xc0   :  { %v170_v15 = vpop.permute.xlu1 %169 }
  0xc1   :  { %v440_v46 = vadd.f32 %v424_v28, %v340_v33 }
  0xc3   :  { %v255_v20 = vpop.permute.xlu0 %254  ;;  %v456_v7 = vmax.f32 %v440_v46, 0.0 }
  0xc4   :  { %v321_v23 = vmul.f32 %v1034_v6, %v255_v20  ;;  %v227_v20 = vmul.f32 %v1030_v4, %v170_v15 }
  0xc5   :  { %v371_v29 = vpop.permute.xlu1 %370 }
  0xc6   :  { %v337_v32 = vadd.f32 %v321_v23, %v237_v21  ;;  %v425_v8 = vmul.f32 %v1042_v12, %v371_v29  ;;  %v228_v21 = vmul.f32 %v1030_v4, %v991_v47  ;;  %v243_v24 = vadd.f32 %v227_v20, %v995_v49 }
  0xc7   :  { %v263_v35 = vpop.permute.xlu0 %262 }
  0xc8   :  { %v323_v38 = vmul.f32 %v1034_v6, %v263_v35  ;;  %v437_v39 = vadd.f32 %v421_v31, %v337_v32 }
  0xc9   :  { %v375_v42 = vpop.permute.xlu1 %374 }
  0xca   :  { %v339_v51 = vadd.f32 %v323_v38, %v239_v36  ;;  %v426_v44 = vmul.f32 %v1042_v12, %v375_v42  ;;  %v453_v55 = vmax.f32 %v437_v39, 0.0  ;;  %v230_v42 = vmul.f32 %v1030_v4, %v999_v50 }
  0xcb   :  { %v271_v57 = vpop.permute.xlu0 %270 }
  0xcc   :  { %v439_v40 = vadd.f32 %v423_v43, %v339_v51  ;;  %v325_v1 = vmul.f32 %v1034_v6, %v271_v57  ;;  %v678_v3 = vpack.c.bf16 %v454_v41, %v453_v55  ;;  %v442_v56 = vadd.f32 %v426_v44, %v342_v59 }
  0xce   :  { %v455_v9 = vmax.f32 %v439_v40, 0.0  ;;  %v341_v11 = vadd.f32 %v325_v1, %v241_v53  ;;  %v95_v13 = vpop.permute.xlu1 %94  ;;  %679 = vmatpush3.bf16.msra.mxu0 %v678_v3  ;;  %v458_v16 = vmax.f32 %v442_v56, 0.0 }
  0xcf   :  { %680 = vmatprep.subr.bf16.mxu0 %v784_v27  ;;  %v279_v2 = vpop.permute.xlu0 %278  ;;  %v244_v28 = vadd.f32 %v228_v21, %v95_v13 }
  0xd0   :  { %v441_v63 = vadd.f32 %v425_v8, %v341_v11  ;;  %v681_v14 = vpack.c.bf16 %v456_v7, %v455_v9  ;;  %v327_v22 = vmul.f32 %v1034_v6, %v279_v2 }
  0xd2   :  { %v457_v45 = vmax.f32 %v441_v63, 0.0  ;;  %682 = vmatpush3.bf16.msra.mxu0 %v681_v14  ;;  %v343_v29 = vadd.f32 %v327_v22, %v243_v24 }
  0xd3   :  { %v283_v17 = vpop.permute.xlu1 %282  ;;  %683 = vmatprep.subr.bf16.mxu0 %v784_v27  ;;  %v287_v39 = vpop.permute.xlu0 %286 }
  0xd4   :  { %v684_v18 = vpack.c.bf16 %v458_v16, %v457_v45  ;;  %v328_v25 = vmul.f32 %v1034_v6, %v283_v17  ;;  %v329_v43 = vmul.f32 %v1034_v6, %v287_v39  ;;  %v232_v16 = vmul.f32 %v1030_v4, %v1005_v54 }
  0xd6   :  { %685 = vmatpush3.bf16.msra.mxu0 %v684_v18  ;;  %v344_v31 = vadd.f32 %v328_v25, %v244_v28 }
  0xd7   :  { %686 = vmatprep.subr.bf16.mxu0 %v784_v27  ;;  %v295_v11 = vpop.permute.xlu0 %294 }
  0xd8   :  { %v180_v19 = vpop.permute.xlu1 %179  ;;  %v331_v63 = vmul.f32 %v1034_v6, %v295_v11 }
  0xd9   :  { %v229_v49 = vmul.f32 %v1030_v4, %v180_v19 }
  0xdb   :  { %v245_v41 = vadd.f32 %v229_v49, %v1002_v52 }
  0xdd   :  { %v379_v23 = vpop.permute.xlu1 %378  ;;  %v345_v44 = vadd.f32 %v329_v43, %v245_v41 }
  0xde   :  { %v427_v26 = vmul.f32 %v1042_v12, %v379_v23 }
  0xe0   :  { %v443_v32 = vadd.f32 %v427_v26, %v343_v29 }
  0xe1   :  { %v383_v30 = vpop.permute.xlu1 %382 }
  0xe2   :  { %v428_v33 = vmul.f32 %v1042_v12, %v383_v30  ;;  %v459_v34 = vmax.f32 %v443_v32, 0.0  ;;  %v303_v30 = vpop.permute.xlu0 %302 }
  0xe3   :  { %v333_v32 = vmul.f32 %v1034_v6, %v303_v30 }
  0xe4   :  { %v444_v15 = vadd.f32 %v428_v33, %v344_v31 }
  0xe6   :  { %v460_v35 = vmax.f32 %v444_v15, 0.0  ;;  %v105_v47 = vpop.permute.xlu1 %104  ;;  %v234_v15 = vmul.f32 %v1030_v4, %v1015_v61  ;;  %v311_v43 = vpop.permute.xlu0 %310  ;;  %v236_v61 = vmul.f32 %v1030_v4, %v1032_v5 }
  0xe7   :  { %v246_v55 = vadd.f32 %v230_v42, %v105_v47 }
  0xe8   :  { %v687_v36 = vpack.c.bf16 %v460_v35, %v459_v34 }
  0xea   :  { %688 = vmatpush3.bf16.msra.mxu0 %v687_v36 }
  0xeb   :  { %v291_v37 = vpop.permute.xlu1 %290  ;;  %689 = vmatprep.subr.bf16.mxu0 %v784_v27 }
  0xec   :  { %v330_v48 = vmul.f32 %v1034_v6, %v291_v37 }
  0xee   :  { %v346_v57 = vadd.f32 %v330_v48, %v246_v55 }
  0xf0   :  { %v190_v38 = vpop.permute.xlu1 %189 }
  0xf1   :  { %v231_v50 = vmul.f32 %v1030_v4, %v190_v38 }
  0xf3   :  { %v247_v13 = vadd.f32 %v231_v50, %v1011_v58 }
  0xf5   :  { %v387_v46 = vpop.permute.xlu1 %386  ;;  %v347_v18 = vadd.f32 %v331_v63, %v247_v13 }
  0xf6   :  { %v429_v51 = vmul.f32 %v1042_v12, %v387_v46 }
  0xf8   :  { %v445_v59 = vadd.f32 %v429_v51, %v345_v44  ;;  %v415_v44 = vpop.permute.xlu0 %414 }
  0xf9   :  { %v391_v53 = vpop.permute.xlu1 %390 }
  0xfa   :  { %v430_v40 = vmul.f32 %v1042_v12, %v391_v53  ;;  %v461_v3 = vmax.f32 %v445_v59, 0.0 }
  0xfc   :  { %v446_v1 = vadd.f32 %v430_v40, %v346_v57  ;;  %v436_v40 = vmul.f32 %v1042_v12, %v415_v44 }
  0xfe   :  { %v462_v52 = vmax.f32 %v446_v1, 0.0  ;;  %v115_v7 = vpop.permute.xlu1 %114 }
  0xff   :  { %v248_v19 = vadd.f32 %v232_v16, %v115_v7 }
 0x100   :  { %v690_v8 = vpack.c.bf16 %v462_v52, %v461_v3  ;;  %v335_v3 = vmul.f32 %v1034_v6, %v311_v43 }
 0x102   :  { %691 = vmatpush3.bf16.msra.mxu0 %v690_v8 }
 0x103   :  { %v299_v9 = vpop.permute.xlu1 %298  ;;  %692 = vmatprep.subr.bf16.mxu0 %v784_v27 }
 0x104   :  { %v332_v45 = vmul.f32 %v1034_v6, %v299_v9 }
 0x106   :  { %v348_v20 = vadd.f32 %v332_v45, %v248_v19 }
 0x108   :  { %v200_v56 = vpop.permute.xlu1 %199 }
 0x109   :  { %v233_v54 = vmul.f32 %v1030_v4, %v200_v56 }
 0x10b   :  { %v249_v31 = vadd.f32 %v233_v54, %v1020_v0 }
 0x10d   :  { %v395_v14 = vpop.permute.xlu1 %394  ;;  %v349_v47 = vadd.f32 %v333_v32, %v249_v31  ;;  %v787_v31 = vmov 1966171168  }
 0x10e   :  { %v431_v17 = vmul.f32 %v1042_v12, %v395_v14  ;;  %v582_v32 = vunpack.c.l.s4 %v787_v31 }
 0x110   :  { %v447_v21 = vadd.f32 %v431_v17, %v347_v18 }
 0x111   :  { %v399_v2 = vpop.permute.xlu1 %398 }
 0x112   :  { %v432_v22 = vmul.f32 %v1042_v12, %v399_v2  ;;  %v463_v24 = vmax.f32 %v447_v21, 0.0 }
 0x114   :  { %v448_v23 = vadd.f32 %v432_v22, %v348_v20  ;;  %v564_v20 = vld [vmem:[%s1143_s5] sm:$0x1] }
 0x116   :  { %v464_v58 = vmax.f32 %v448_v23, 0.0  ;;  %v125_v25 = vpop.permute.xlu1 %124 }
 0x117   :  { %v250_v36 = vadd.f32 %v234_v15, %v125_v25  ;;  %v583_v15 = vunpack.c.0.s8 %v582_v32 }
 0x118   :  { %v693_v26 = vpack.c.bf16 %v464_v58, %v463_v24  ;;  %v569_v58 = vrot.slane %v564_v20, %v219_v62 }
 0x11a   :  { %694 = vmatpush3.bf16.msra.mxu0 %v693_v26 }
 0x11b   :  { %v307_v28 = vpop.permute.xlu1 %306  ;;  %695 = vmatprep.subr.bf16.mxu0 %v784_v27 }
 0x11c   :  { %v334_v34 = vmul.f32 %v1034_v6, %v307_v28 }
 0x11e   :  { %v350_v49 = vadd.f32 %v334_v34, %v250_v36 }
 0x120   :  { %v210_v29 = vpop.permute.xlu1 %209 }
 0x121   :  { %v235_v51 = vmul.f32 %v1030_v4, %v210_v29 }
 0x123   :  { %v251_v59 = vadd.f32 %v235_v51, %v1039_v10 }
 0x125   :  { %v403_v33 = vpop.permute.xlu1 %402  ;;  %v351_v8 = vadd.f32 %v335_v3, %v251_v59 }
 0x126   :  { %v433_v35 = vmul.f32 %v1042_v12, %v403_v33 }
 0x128   :  { %v449_v38 = vadd.f32 %v433_v35, %v349_v47  ;;  %v586_v47 = vsub.s32 %v583_v15, %v1013_v60 }
 0x129   :  { %v407_v37 = vpop.permute.xlu1 %406 }
 0x12a   :  { %v434_v39 = vmul.f32 %v1042_v12, %v407_v37  ;;  %v465_v0 = vmax.f32 %v449_v38, 0.0 }
 0x12c   :  { %v450_v41 = vadd.f32 %v434_v39, %v350_v49  ;;  %v576_v39 = vmul.f32 -0.5, %v564_v20 }
 0x12e   :  { %v466_v46 = vmax.f32 %v450_v41, 0.0  ;;  %v135_v42 = vpop.permute.xlu1 %134  ;;  %v577_v43 = vmul.f32 %v576_v39, %v564_v20 }
 0x12f   :  { %v252_v53 = vadd.f32 %v236_v61, %v135_v42 }
 0x130   :  { %v696_v48 = vpack.c.bf16 %v466_v46, %v465_v0 }
 0x132   :  { %697 = vmatpush3.bf16.msra.mxu0 %v696_v48 }
 0x133   :  { %v315_v55 = vpop.permute.xlu1 %314  ;;  %698 = vmatprep.subr.bf16.mxu0 %v784_v27  ;;  %v469_v27 = vld [vmem:[%s1141_s3] sm:$0x3]  ;;  %s788_s3 = smov [#allocation2]  }
 0x134   :  { %v336_v57 = vmul.f32 %v1034_v6, %v315_v55  ;;  %s616_s5 = sshll.u32 %s788_s3, 4  ;;  %s617_s5 = int_to_ptr.vmem [resolvable:$true] %s616_s5 }
 0x135   :  { %s757_s17 = scalar_lea.vmem %s617_s5, 32  ;;  %p762_p1 = scmp.lt.s32.totalorder %s617_s5, %s617_s5 }
 0x136   :  { %v352_v1 = vadd.f32 %v336_v57, %v252_v53  ;;  %p758_p0 = scmp.ne.s32.totalorder %s617_s5, %s757_s17  ;;  %p763_p2 = scmp.lt.s32.totalorder %s757_s17, %s757_s17 }
 0x138   :  { %v411_v52 = vpop.permute.xlu1 %410  ;;  %v452_v7 = vadd.f32 %v436_v40, %v352_v1  ;;  %p764_p3 = por %p763_p2, %p762_p1 }
 0x139   :  { %v435_v4 = vmul.f32 %v1042_v12, %v411_v52 }
 0x13a   :  { %v468_v9 = vmax.f32 %v452_v7, 0.0  ;;  %p765_p4 = pnand %p764_p3, %p758_p0 }
 0x13b   :  { %v451_v5 = vadd.f32 %v435_v4, %v351_v8 }
 0x13d   :  { %v467_v50 = vmax.f32 %v451_v5, 0.0  ;;  %v474_v10 = vpop.permute.xlu1 %473 }
 0x13f   :  { %v699_v56 = vpack.c.bf16 %v468_v9, %v467_v50 }
 0x141   :  { %700 = vmatpush3.bf16.msra.mxu0 %v699_v56 }
 0x144   :  { %675 = vmatmul.mubr.f32.vlgmr.msra.gmra.mrb[0].mxu0 %v469_v27 }
 0x217   :  { %v542_v11 = vpop.f32.mrb[0].mxu0 }
 0x218   :  { %v543_v13 = vadd.f32 %v542_v11, %v474_v10  ;;  %v676_v63 = vpop.f32.mrb[1].mxu0 }
 0x21a   :  { %v549_v6 = vand.u32 2147483647, %v543_v13  ;;  %v546_v23 = vmax.f32 %v543_v13, 0.0  ;;  %vm547_vm2 = vcmp.ne.f32.partialorder %v543_v13, %v543_v13 }
 0x21c   :  { %v550_v14 = vsub.f32 0.0, %v549_v6 }
 0x21e   :  { %v551_v16 = vmul.f32 1.442695, %v550_v14 }
 0x220   :  { %745 = vpow2.f32 %v551_v16 }
 0x22a   :  { %v746_v45 = vpop.eup %745 }
 0x22b   :  { %v553_v12 = vadd.f32 1.0, %v746_v45  ;;  %v556_v17 = vmul.f32 -0.5, %v746_v45  ;;  %v559_v19 = vand.u32 2147483647, %v746_v45 }
 0x22d   :  { %747 = vlog2.f32 %v553_v12  ;;  %v557_v18 = vadd.f32 1.0, %v556_v17  ;;  %vm560_vm1 = vcmp.lt.f32.partialorder %v559_v19, 0.0004427343 }
 0x22f   :  { %v558_v22 = vmul.f32 %v746_v45, %v557_v18 }
 0x237   :  { %v748_v2 = vpop.eup %747 }
 0x238   :  { %v555_v21 = vmul.f32 0.6931472, %v748_v2 }
 0x23a   :  { %v561_v24 = vsel %vm560_vm1, %v558_v22, %v555_v21 }
 0x23b   :  { %v562_v25 = vadd.f32 %v561_v24, %v546_v23 }
 0x23d   :  { %v563_v26 = vsel %vm547_vm2, %v543_v13, %v562_v25 }
 0x23e   :  { %v571_v28 = vmul.f32 %v569_v58, %v563_v26 }
 0x240   :  { %v573_v54 = vrot.slane %v571_v28, 1 }
 0x242   :  { %v575_v29 = vadd.f32 %v573_v54, %v543_v13 }
 0x244   :  { %749 = vtanh.f32 %v575_v29 }
 0x245   :  { %751 = vlog2.f32 %v563_v26 }
 0x24e   :  { %v750_v30 = vpop.eup %749 }
 0x24f   :  { %753 = vtanh.f32 %v750_v30  ;;  %v607_v33 = vmul.f32 2.0, %v750_v30  ;;  %v752_v34 = vpop.eup %751 }
 0x250   :  { %v579_v35 = vmul.f32 0.6931472, %v752_v34 }
 0x251   :  { %608 = vst [vmem:[#allocation2] sm:$0x1] %v607_v33 }
 0x252   :  { %v587_v37 = vrot.slane %v579_v35, %v586_v47 }
 0x254   :  { %v588_v41 = vcombine.high %v587_v37, %v587_v37 }
 0x256   :  { %v595_v0 = vrot.slane %v588_v41, %v586_v47 }
 0x258   :  { %v597_v46 = vsub.f32 %v577_v43, %v595_v0 }
 0x259   :  { %v754_v62 = vpop.eup %753 }
 0x25a   :  { %v601_v36 = vmul.f32 %v754_v62, %v754_v62  ;;  %v624_v48 = vadd.f32 -0.9189385, %v597_v46 }
 0x25c   :  { %v602_v49 = vsub.f32 1.0, %v601_v36 }
 0x25e   :  { %v603_v38 = vadd.f32 1e-07, %v602_v49 }
 0x260   :  { %755 = vlog2.f32 %v603_v38 }
 0x26a   :  { %v756_v42 = vpop.eup %755 }
 0x26b   :  { %v605_v51 = vmul.f32 0.6931472, %v756_v42 }
 0x26d   :  { %v606_v61 = vsub.f32 %v624_v48, %v605_v51 }
 0x26f   :  { %609 = vst [vmem:[#allocation2 + $0x1] sm:$0x1] %v606_v61 }
 0x270   :  { %768 = shalt.err (!%p765_p4)
}
 0x271   :  { %s769_s20 = scalar_lea.hbm %s1144_s6, 32 }
 0x272   :  { %p770_p5 = scmp.ne.s32.totalorder %s1144_s6, %s769_s20  ;;  %p773_p6 = scmp.lt.u32.totalorder %s769_s20, %s1144_s6 }
 0x274   :  { %p775_p7 = pnand %p773_p6, %p770_p5 }
 0x276   :  { %778 = shalt.err (!%p775_p7)
}
 0x277   :  { %619 = dma.vmem_to_hbm [thread:$0]  %s617_s5, 32, %s1144_s6, [#allocation3]  }
 0x278   :  { %779 = dma.done.wait [#allocation3], 32  }
 0x279   :  { %780 = vsyncadd [#allocation3], 4294967264 }
 0x27a   :  { %623 = vsyncpa [#allocation3], 1 }

</bundles_post_ra>
